<compile_context>
chip_gen: v7x
topology: tpu7x:2x2x1
jax: 0.10.0
libtpu: 0.0.40
codegen_flags: <defaults>
</compile_context>

<pallas_src>
import jax
import jax.numpy as jnp
from jax.experimental import pallas as pl
from jax.experimental.pallas import tpu as pltpu

_LANE_CANDIDATES = (8192, 4096, 2048, 1024, 512, 256, 128)
# ~2 MiB per block: on the HBM-roofline plateau, 8 MiB total double-buffered
# VMEM per core -> safe on v5e/v6e/v7x with headroom for internal scratch.
_TARGET_BLOCK_BYTES = 2 * 1024 * 1024
_SINGLE_BLOCK_LIMIT_BYTES = 4 * 1024 * 1024
_VMEM_LIMIT_BYTES = 32 * 1024 * 1024


def _sublane_min(itemsize):
    # dtype-aware minimum sublane tile: f32 -> 8, bf16/f16 -> 16, int8/fp8 -> 32
    return {4: 8, 2: 16, 1: 32}.get(itemsize, 8)


def _copy_kernel(x_ref, o_ref):
    # identity copy of the current (block_rows, lanes) tile
    o_ref[...] = x_ref[...]


def _resolve_shape(total, shape):
    """Resolve a torch.view-style target shape (supports a single -1)."""
    shape = list(shape)
    if any(d == -1 for d in shape):
        known = 1
        for d in shape:
            if d != -1:
                known *= d
        shape = [total // known if d == -1 else d for d in shape]
    out_total = 1
    for d in shape:
        out_total *= d
    assert out_total == total, "view shape incompatible with number of elements"
    return tuple(shape)


def _pick_block_rows(rows, lanes, itemsize):
    """Largest block_rows <= ~2 MiB that is a multiple of the sublane minimum,
    preferring an exact divisor of `rows` so no masked partial tile is needed."""
    sub_min = _sublane_min(itemsize)
    cap = max(
        sub_min,
        (_TARGET_BLOCK_BYTES // (lanes * itemsize)) // sub_min * sub_min,
    )
    if rows <= cap:
        return rows  # single block == full array dims (always legal)
    # Prefer an exact divisor of rows (no partial last block -> unmasked stores).
    br = cap
    while br >= sub_min:
        if rows % br == 0:
            return br
        br -= sub_min
    return cap  # fall back: partial last block, Pallas masks it correctly


def view_pallas(x, shape, *, use_kernel=True):
    """Pallas equivalent of torch.Tensor.view(*shape)."""
    total = x.size
    shape = _resolve_shape(total, shape)

    # A view requires zero data movement; the plain reshape is the real answer.
    # The kernel path is kept for when an explicit materializing copy is wanted.
    if not use_kernel or total == 0:
        return x.reshape(shape)

    itemsize = jnp.dtype(x.dtype).itemsize

    # Lane-dense, pad-free 2D factorization of the flat row-major buffer.
    lanes = None
    for cand in _LANE_CANDIDATES:
        if total % cand == 0:
            lanes = cand
            break

    if lanes is None:
        # Total not a multiple of 128: run one full-array block if small enough,
        # otherwise use the zero-cost reshape (avoids pad + slice HBM copies).
        if total * itemsize <= _SINGLE_BLOCK_LIMIT_BYTES:
            rows, lanes, block_rows = 1, total, 1
        else:
            # TODO(synk): masked tail-tile kernel for large non-128-multiple sizes.
            return x.reshape(shape)
    else:
        rows = total // lanes
        block_rows = _pick_block_rows(rows, lanes, itemsize)

    flat2d = x.reshape(rows, lanes)       # zero-cost glue (row-major)
    n_blocks = pl.cdiv(rows, block_rows)

    out2d = pl.pallas_call(
        _copy_kernel,
        out_shape=jax.ShapeDtypeStruct((rows, lanes), x.dtype),
        grid_spec=pltpu.PrefetchScalarGridSpec(
            num_scalar_prefetch=0,
            grid=(n_blocks,),
            in_specs=[pl.BlockSpec((block_rows, lanes), lambda i: (i, 0))],
            out_specs=pl.BlockSpec((block_rows, lanes), lambda i: (i, 0)),
        ),
        compiler_params=pltpu.CompilerParams(
            dimension_semantics=("parallel",),   # shards across v7x's 2 TCs
            vmem_limit_bytes=_VMEM_LIMIT_BYTES,
        ),
        cost_estimate=pl.CostEstimate(
            flops=0,
            transcendentals=0,
            bytes_accessed=2 * total * itemsize,
        ),
        # input_output_aliases={0: 0} would donate the input buffer and halve
        # the HBM footprint, but callers (like the demo below) may still need
        # `x`, so it is intentionally left off.
    )(flat2d)

    # Zero-cost reinterpretation with the requested shape (no slice, no pad).
    return out2d.reshape(shape)


class View:
    """JAX/Pallas mirror of the PyTorch View module."""

    def __init__(self, shape, use_kernel=True):
        self.shape = shape
        self.use_kernel = use_kernel

    def __call__(self, x):
        return view_pallas(x, self.shape, use_kernel=self.use_kernel)


if __name__ == "__main__":
    key = jax.random.PRNGKey(0)

    # Small NCHW-like input, as a decoder/encoder View would typically see.
    x = jax.random.normal(key, (2, 4, 16, 16), dtype=jnp.float32)

    # View it as (batch, features) — the common use of this module.
    y = View((2, -1))(x)
    y = jax.block_until_ready(y)
    ref = x.reshape(2, -1)
    assert y.shape == ref.shape, (y.shape, ref.shape)
    assert y.dtype == ref.dtype
    assert bool(jnp.array_equal(y, ref))

    # 4D target shape round-trip.
    z = View((2, 4, 16, 16))(y)
    z = jax.block_until_ready(z)
    assert bool(jnp.array_equal(z, x))

    # bf16 input exercises the dtype-aware tiling path.
    xb = x.astype(jnp.bfloat16)
    yb = jax.block_until_ready(View((-1, 256))(xb))
    assert bool(jnp.array_equal(yb, xb.reshape(-1, 256)))

    # Larger input exercises the multi-block (tiled) path: 1M f32 -> (128, 8192)
    # split into 2 MiB blocks along rows.
    key2 = jax.random.PRNGKey(0)
    xl = jax.random.normal(key2, (8, 128, 32, 32), dtype=jnp.float32)
    yl = jax.block_until_ready(View((8, -1))(xl))
    assert bool(jnp.array_equal(yl, xl.reshape(8, -1)))

    # Odd element count (not a multiple of 128) exercises the single-block path.
    xo = jax.random.normal(key, (3, 5, 7), dtype=jnp.float32)
    yo = jax.block_until_ready(View((5, 21))(xo))
    assert bool(jnp.array_equal(yo, xo.reshape(5, 21)))

    print("KERNEL_OK")
</pallas_src>

<mosaic_0001>
module attributes {stable_mosaic.version = 11 : i64} {
  func.func @_copy_kernel(%arg0: i32, %arg1: memref<1x2048xf32, #tpu.memory_space<vmem>>, %arg2: memref<1x2048xf32, #tpu.memory_space<vmem>>) attributes {dimension_semantics = [#tpu.dimension_semantics<parallel>], iteration_bounds = array<i64: 1>, scalar_prefetch = 0 : i64, scratch_operands = 0 : i64, tpu.core_type = #tpu.core_type<tc>, window_params = [{transform_indices = @transform_0, window_bounds = array<i64: 1, 2048>}, {transform_indices = @transform_1, window_bounds = array<i64: 1, 2048>}]} {
    %c0 = arith.constant 0 : index
    %c0_0 = arith.constant 0 : index
    %0 = vector.load %arg1[%c0, %c0_0] : memref<1x2048xf32, #tpu.memory_space<vmem>>, vector<1x2048xf32>
    %c0_1 = arith.constant 0 : index
    %c0_2 = arith.constant 0 : index
    %1 = vector.load %arg2[%c0_1, %c0_2] : memref<1x2048xf32, #tpu.memory_space<vmem>>, vector<1x2048xf32>
    tpu.vector_store %arg2[%c0_1, %c0_2], %0 {strides = array<i32>} : memref<1x2048xf32, #tpu.memory_space<vmem>>, vector<1x2048xf32>,
    return
  }
  func.func @transform_0(%arg0: i32) -> (i32, i32) {
    %c0_i32 = arith.constant 0 : i32
    %c0_i32_0 = arith.constant 0 : i32
    return %arg0, %c0_i32 : i32, i32
  }
  func.func @transform_1(%arg0: i32) -> (i32, i32) {
    %c0_i32 = arith.constant 0 : i32
    %c0_i32_0 = arith.constant 0 : i32
    return %arg0, %c0_i32 : i32, i32
  }
}

</mosaic_0001>

<bundles_post_ra>
// kernel: tpu_custom_call.1
= control target key start
LH: loop header
LB: loop body
LE: loop exit
PB: predicated region body
PF: predicated region fallthrough
CT: control target
= control target key end

     0   :  { %6 = vsyncpa [#allocation3], 0  ;;  %s126_s0 = inlined_call_operand.hbm [shape: f32[1,2048], index: 0, kind: input, shape index: {}]   ;;  %s127_s1 = inlined_call_operand.hbm [shape: f32[1,2048], index: 1, kind: output, shape index: {}]  }
   0x1   :  { %7 = vsyncpa [#allocation4], 0  ;;  %s90_s6 = smov [#allocation2]   ;;  %s42_s10 = scalar_lea.hbm %s126_s0, 256 }
   0x2   :  { %s14_s7 = sshll.u32 %s90_s6, 4  ;;  %p43_p0 = scmp.ne.s32.totalorder %s126_s0, %s42_s10  ;;  %s15_s7 = int_to_ptr.vmem [resolvable:$true] %s14_s7 }
   0x3   :  { %p46_p1 = scmp.lt.u32.totalorder %s42_s10, %s126_s0 }
   0x5   :  { %p48_p2 = pnand %p46_p1, %p43_p0 }
   0x7   :  { %51 = shalt.err (!%p48_p2)
}
   0x8   :  { %s52_s15 = scalar_lea.vmem %s15_s7, 256  ;;  %p57_p4 = scmp.lt.s32.totalorder %s15_s7, %s15_s7 }
   0x9   :  { %p53_p3 = scmp.ne.s32.totalorder %s15_s7, %s52_s15  ;;  %p58_p5 = scmp.lt.s32.totalorder %s52_s15, %s52_s15 }
   0xb   :  { %p59_p6 = por %p58_p5, %p57_p4 }
   0xd   :  { %p60_p7 = pnand %p59_p6, %p53_p3 }
   0xf   :  { %63 = shalt.err (!%p60_p7)
}
  0x10   :  { %17 = dma.hbm_to_vmem [thread:$0]  %s126_s0, 256, %s15_s7, [#allocation3]  }
  0x11   :  { %86 = dma.done.wait [#allocation3], 256  }
  0x12   :  { %87 = vsyncadd [#allocation3], 4294967040  ;;  %s91_s18 = smov [#allocation5]   ;;  %v21_v0 = vld [vmem:[#allocation2] sm:$0xff]  ;;  %v22_v1 = vld [vmem:[#allocation2 + $0x8] sm:$0xff] }
  0x13   :  { %s31_s19 = sshll.u32 %s91_s18, 4  ;;  %23 = vst [vmem:[#allocation5] sm:$0xff] %v21_v0  ;;  %24 = vst [vmem:[#allocation5 + $0x8] sm:$0xff] %v22_v1  ;;  %s32_s19 = int_to_ptr.vmem [resolvable:$true] %s31_s19 }
  0x14   :  { %s64_s20 = scalar_lea.vmem %s32_s19, 256  ;;  %p69_p9 = scmp.lt.s32.totalorder %s32_s19, %s32_s19 }
  0x15   :  { %p65_p8 = scmp.ne.s32.totalorder %s32_s19, %s64_s20  ;;  %p70_p10 = scmp.lt.s32.totalorder %s64_s20, %s64_s20 }
  0x17   :  { %p71_p11 = por %p70_p10, %p69_p9 }
  0x19   :  { %p72_p12 = pnand %p71_p11, %p65_p8 }
  0x1b   :  { %75 = shalt.err (!%p72_p12)
}
  0x1c   :  { %s76_s0 = scalar_lea.hbm %s127_s1, 256 }
  0x1d   :  { %p77_p13 = scmp.ne.s32.totalorder %s127_s1, %s76_s0  ;;  %p80_p0 = scmp.lt.u32.totalorder %s76_s0, %s127_s1 }
  0x1f   :  { %p82_p1 = pnand %p80_p0, %p77_p13 }
  0x21   :  { %85 = shalt.err (!%p82_p1)
}
  0x22   :  { %34 = dma.vmem_to_hbm [thread:$0]  %s32_s19, 256, %s127_s1, [#allocation4]  }
  0x23   :  { %88 = dma.done.wait [#allocation4], 256  }
  0x24   :  { %89 = vsyncadd [#allocation4], 4294967040 }
  0x25   :  { %38 = vsyncpa [#allocation3], 1 }
  0x26   :  { %39 = vsyncpa [#allocation4], 1 }

</bundles_post_ra>
